<compile_context>
chip_gen: v6e
topology: v6e:2x2x1
jax: 0.10.0
libtpu: 0.0.40
codegen_flags: <defaults>
</compile_context>

<pallas_src>
import functools
import math

import jax
import jax.numpy as jnp
from jax.experimental import pallas as pl
from jax.experimental.pallas import tpu as pltpu


def _pe_kernel(x_ref, o_ref, *, cos_vals, sin_vals, n_l, sn):
    # x_ref: (bt, 2*SN) in the input's native dtype
    # o_ref: (bt, 3*n_l*SN) in the output dtype
    x_r = x_ref[:, pl.ds(0, sn)].astype(jnp.float32)    # radial coordinate
    x_z = x_ref[:, pl.ds(sn, sn)].astype(jnp.float32)   # z coordinate
    odt = o_ref.dtype
    z_slab = x_z.astype(odt)
    # Unrolled at trace time (n_l is small); every store is a full (bt, SN)
    # lane-dense slab at a static, lane-aligned offset -> unmasked vst.
    for l in range(n_l):
        o_ref[:, pl.ds((3 * l) * sn, sn)] = (
            jnp.float32(cos_vals[l]) * x_r).astype(odt)
        o_ref[:, pl.ds((3 * l + 1) * sn, sn)] = (
            jnp.float32(sin_vals[l]) * x_r).astype(odt)
        o_ref[:, pl.ds((3 * l + 2) * sn, sn)] = z_slab


def positional_encoding_local(x, *, d_features_in=4, sectors=16, npoint=16,
                              out_block_bytes=4 * 1024 * 1024,
                              out_dtype=jnp.float32):
    """x: [B, 2, sectors, npoint] -> [B, 3*d_features_in, sectors, npoint]."""
    B, two, S, N = x.shape
    assert two == 2 and S == sectors and N == npoint
    L = d_features_in
    SN = S * N
    C = 3 * L

    # Trace-time constants, matching the module's __init__ exactly:
    # div_term[l] = exp((2l)/L * 2 * (-ln L)), pe_cos = cos(alpha*div), etc.
    alpha = 2.0 * math.pi / sectors
    cos_vals, sin_vals = [], []
    for l in range(L):
        div = math.exp((2.0 * l) / L * 2.0 * (-math.log(L)))
        cos_vals.append(math.cos(alpha * div))
        sin_vals.append(math.sin(alpha * div))

    # Free row-major reshape to a fully lane-dense 2-D layout.  No dtype cast
    # here: the kernel casts at load (free on the VPU, halves input DMA for
    # bf16/f16 inputs).
    x_flat = x.reshape(B, 2 * SN)

    # --- batch tiling -------------------------------------------------------
    per_b_out = C * SN * jnp.dtype(out_dtype).itemsize
    target = max(1, int(out_block_bytes) // per_b_out)
    bt = min(B, target)
    # v7x has 2 TensorCores: the ("parallel",) batch axis only shards across
    # them when grid > 1, so keep >=2 steps once the split is worth it.
    # Harmless on v5e/v6e (single TC).
    if B * per_b_out > (1 << 20):
        bt = min(bt, pl.cdiv(B, 2))
    if bt < B:
        # Partial tiles: keep the batch (sublane) block dim a multiple of 8 so
        # full tiles stay unpadded; Pallas handles the ragged last tile.
        bt = min(B, max(8, (bt // 8) * 8))
    grid = (pl.cdiv(B, bt),)

    kernel = functools.partial(_pe_kernel,
                               cos_vals=tuple(cos_vals),
                               sin_vals=tuple(sin_vals),
                               n_l=L, sn=SN)

    out = pl.pallas_call(
        kernel,
        out_shape=jax.ShapeDtypeStruct((B, C * SN), out_dtype),
        grid_spec=pltpu.PrefetchScalarGridSpec(
            num_scalar_prefetch=0,
            grid=grid,
            in_specs=[
                # (bt, 2*SN): last dim is the full extent and lane-dense.
                pl.BlockSpec((bt, 2 * SN), lambda i: (i, 0)),
            ],
            # (bt, 3L*SN): channels live on the lane axis -> full unmasked vst.
            out_specs=pl.BlockSpec((bt, C * SN), lambda i: (i, 0)),
        ),
        compiler_params=pltpu.CompilerParams(
            dimension_semantics=("parallel",),
        ),
    )(x_flat)

    # Free reshape: channel c = 3*l + k occupies a contiguous SN run, which
    # realizes the PyTorch 0::3 / 1::3 / 2::3 interleave exactly.
    return out.reshape(B, C, S, N)


def positional_encoding_local_ref(x, *, d_features_in=4, sectors=16, npoint=16):
    """Plain-JAX reference mirroring the PyTorch forward exactly."""
    L = d_features_in
    alpha = 2.0 * math.pi / sectors
    div_term = jnp.exp(
        jnp.arange(0, 2 * L, 2, dtype=jnp.float32) / L * 2.0 * (-math.log(L))
    )
    pe_cos = jnp.cos(alpha * div_term)
    pe_sin = jnp.sin(alpha * div_term)
    B = x.shape[0]
    x = x.astype(jnp.float32)
    x_pe = jnp.zeros((B, 3 * L, sectors, npoint), jnp.float32)
    x_r = x[:, 0:1, :, :]
    x_pe = x_pe.at[:, 0::3].set(x_r * pe_cos.reshape(1, -1, 1, 1))
    x_pe = x_pe.at[:, 1::3].set(x_r * pe_sin.reshape(1, -1, 1, 1))
    x_pe = x_pe.at[:, 2::3].set(jnp.repeat(x[:, 1:2, :, :], L, axis=1))
    return x_pe


if __name__ == "__main__":
    # Small shapes consistent with the module: B=2, 2 input channels,
    # sectors=16, npoint=16, d_features_in=4 -> output channels = 12.
    B, L, S, N = 2, 4, 16, 16
    key = jax.random.PRNGKey(0)
    x = jax.random.normal(key, (B, 2, S, N), dtype=jnp.float32)

    out = positional_encoding_local(x, d_features_in=L, sectors=S, npoint=N)
    out = jax.block_until_ready(out)

    ref = positional_encoding_local_ref(x, d_features_in=L, sectors=S, npoint=N)
    assert out.shape == (B, 3 * L, S, N), out.shape
    assert out.dtype == jnp.float32
    # Constants are evaluated in f64 Python vs f32 jnp in the reference; allow
    # a few f32 ULPs.
    assert jnp.allclose(out, ref, atol=1e-5, rtol=1e-5), "mismatch vs reference"

    print("KERNEL_OK")
</pallas_src>

<mosaic_0001>
module attributes {stable_mosaic.version = 11 : i64} {
  func.func @_pe_kernel(%arg0: i32, %arg1: memref<2x512xf32, #tpu.memory_space<vmem>>, %arg2: memref<2x3072xf32, #tpu.memory_space<vmem>>) attributes {dimension_semantics = [#tpu.dimension_semantics<parallel>], iteration_bounds = array<i64: 1>, scalar_prefetch = 0 : i64, scratch_operands = 0 : i64, tpu.core_type = #tpu.core_type<tc>, window_params = [{transform_indices = @transform_0, window_bounds = array<i64: 2, 512>}, {transform_indices = @transform_1, window_bounds = array<i64: 2, 3072>}]} {
    %c0 = arith.constant 0 : index
    %c0_0 = arith.constant 0 : index
    %0 = vector.load %arg1[%c0, %c0_0] : memref<2x512xf32, #tpu.memory_space<vmem>>, vector<2x256xf32>
    %c0_1 = arith.constant 0 : index
    %c256 = arith.constant 256 : index
    %1 = vector.load %arg1[%c0_1, %c256] : memref<2x512xf32, #tpu.memory_space<vmem>>, vector<2x256xf32>
    %cst = arith.constant 0.923879504 : f32
    %2 = vector.broadcast %cst : f32 to vector<2x256xf32>
    %3 = arith.mulf %2, %0 : vector<2x256xf32>
    %c0_2 = arith.constant 0 : index
    %c0_3 = arith.constant 0 : index
    %4 = vector.load %arg2[%c0_2, %c0_3] : memref<2x3072xf32, #tpu.memory_space<vmem>>, vector<2x256xf32>
    tpu.vector_store %arg2[%c0_2, %c0_3], %3 {strides = array<i32>} : memref<2x3072xf32, #tpu.memory_space<vmem>>, vector<2x256xf32>,
    %cst_4 = arith.constant 0.382683426 : f32
    %5 = vector.broadcast %cst_4 : f32 to vector<2x256xf32>
    %6 = arith.mulf %5, %0 : vector<2x256xf32>
    %c0_5 = arith.constant 0 : index
    %c256_6 = arith.constant 256 : index
    %7 = vector.load %arg2[%c0_5, %c256_6] : memref<2x3072xf32, #tpu.memory_space<vmem>>, vector<2x256xf32>
    tpu.vector_store %arg2[%c0_5, %c256_6], %6 {strides = array<i32>} : memref<2x3072xf32, #tpu.memory_space<vmem>>, vector<2x256xf32>,
    %c0_7 = arith.constant 0 : index
    %c512 = arith.constant 512 : index
    %8 = vector.load %arg2[%c0_7, %c512] : memref<2x3072xf32, #tpu.memory_space<vmem>>, vector<2x256xf32>
    tpu.vector_store %arg2[%c0_7, %c512], %1 {strides = array<i32>} : memref<2x3072xf32, #tpu.memory_space<vmem>>, vector<2x256xf32>,
    %cst_8 = arith.constant 0.995184719 : f32
    %9 = vector.broadcast %cst_8 : f32 to vector<2x256xf32>
    %10 = arith.mulf %9, %0 : vector<2x256xf32>
    %c0_9 = arith.constant 0 : index
    %c768 = arith.constant 768 : index
    %11 = vector.load %arg2[%c0_9, %c768] : memref<2x3072xf32, #tpu.memory_space<vmem>>, vector<2x256xf32>
    tpu.vector_store %arg2[%c0_9, %c768], %10 {strides = array<i32>} : memref<2x3072xf32, #tpu.memory_space<vmem>>, vector<2x256xf32>,
    %cst_10 = arith.constant 0.0980171412 : f32
    %12 = vector.broadcast %cst_10 : f32 to vector<2x256xf32>
    %13 = arith.mulf %12, %0 : vector<2x256xf32>
    %c0_11 = arith.constant 0 : index
    %c1024 = arith.constant 1024 : index
    %14 = vector.load %arg2[%c0_11, %c1024] : memref<2x3072xf32, #tpu.memory_space<vmem>>, vector<2x256xf32>
    tpu.vector_store %arg2[%c0_11, %c1024], %13 {strides = array<i32>} : memref<2x3072xf32, #tpu.memory_space<vmem>>, vector<2x256xf32>,
    %c0_12 = arith.constant 0 : index
    %c1280 = arith.constant 1280 : index
    %15 = vector.load %arg2[%c0_12, %c1280] : memref<2x3072xf32, #tpu.memory_space<vmem>>, vector<2x256xf32>
    tpu.vector_store %arg2[%c0_12, %c1280], %1 {strides = array<i32>} : memref<2x3072xf32, #tpu.memory_space<vmem>>, vector<2x256xf32>,
    %cst_13 = arith.constant 0.999698817 : f32
    %16 = vector.broadcast %cst_13 : f32 to vector<2x256xf32>
    %17 = arith.mulf %16, %0 : vector<2x256xf32>
    %c0_14 = arith.constant 0 : index
    %c1536 = arith.constant 1536 : index
    %18 = vector.load %arg2[%c0_14, %c1536] : memref<2x3072xf32, #tpu.memory_space<vmem>>, vector<2x256xf32>
    tpu.vector_store %arg2[%c0_14, %c1536], %17 {strides = array<i32>} : memref<2x3072xf32, #tpu.memory_space<vmem>>, vector<2x256xf32>,
    %cst_15 = arith.constant 0.024541229 : f32
    %19 = vector.broadcast %cst_15 : f32 to vector<2x256xf32>
    %20 = arith.mulf %19, %0 : vector<2x256xf32>
    %c0_16 = arith.constant 0 : index
    %c1792 = arith.constant 1792 : index
    %21 = vector.load %arg2[%c0_16, %c1792] : memref<2x3072xf32, #tpu.memory_space<vmem>>, vector<2x256xf32>
    tpu.vector_store %arg2[%c0_16, %c1792], %20 {strides = array<i32>} : memref<2x3072xf32, #tpu.memory_space<vmem>>, vector<2x256xf32>,
    %c0_17 = arith.constant 0 : index
    %c2048 = arith.constant 2048 : index
    %22 = vector.load %arg2[%c0_17, %c2048] : memref<2x3072xf32, #tpu.memory_space<vmem>>, vector<2x256xf32>
    tpu.vector_store %arg2[%c0_17, %c2048], %1 {strides = array<i32>} : memref<2x3072xf32, #tpu.memory_space<vmem>>, vector<2x256xf32>,
    %cst_18 = arith.constant 0.999981164 : f32
    %23 = vector.broadcast %cst_18 : f32 to vector<2x256xf32>
    %24 = arith.mulf %23, %0 : vector<2x256xf32>
    %c0_19 = arith.constant 0 : index
    %c2304 = arith.constant 2304 : index
    %25 = vector.load %arg2[%c0_19, %c2304] : memref<2x3072xf32, #tpu.memory_space<vmem>>, vector<2x256xf32>
    tpu.vector_store %arg2[%c0_19, %c2304], %24 {strides = array<i32>} : memref<2x3072xf32, #tpu.memory_space<vmem>>, vector<2x256xf32>,
    %cst_20 = arith.constant 0.00613588467 : f32
    %26 = vector.broadcast %cst_20 : f32 to vector<2x256xf32>
    %27 = arith.mulf %26, %0 : vector<2x256xf32>
    %c0_21 = arith.constant 0 : index
    %c2560 = arith.constant 2560 : index
    %28 = vector.load %arg2[%c0_21, %c2560] : memref<2x3072xf32, #tpu.memory_space<vmem>>, vector<2x256xf32>
    tpu.vector_store %arg2[%c0_21, %c2560], %27 {strides = array<i32>} : memref<2x3072xf32, #tpu.memory_space<vmem>>, vector<2x256xf32>,
    %c0_22 = arith.constant 0 : index
    %c2816 = arith.constant 2816 : index
    %29 = vector.load %arg2[%c0_22, %c2816] : memref<2x3072xf32, #tpu.memory_space<vmem>>, vector<2x256xf32>
    tpu.vector_store %arg2[%c0_22, %c2816], %1 {strides = array<i32>} : memref<2x3072xf32, #tpu.memory_space<vmem>>, vector<2x256xf32>,
    return
  }
  func.func @transform_0(%arg0: i32) -> (i32, i32) {
    %c0_i32 = arith.constant 0 : i32
    %c0_i32_0 = arith.constant 0 : i32
    return %arg0, %c0_i32 : i32, i32
  }
  func.func @transform_1(%arg0: i32) -> (i32, i32) {
    %c0_i32 = arith.constant 0 : i32
    %c0_i32_0 = arith.constant 0 : i32
    return %arg0, %c0_i32 : i32, i32
  }
}

</mosaic_0001>

<bundles_post_ra>
// kernel: tpu_custom_call.1
= control target key start
LH: loop header
LB: loop body
LE: loop exit
PB: predicated region body
PF: predicated region fallthrough
CT: control target
= control target key end

     0   :  { %6 = vsyncpa [#allocation3], 0  ;;  %s122_s0 = inlined_call_operand.hbm [shape: f32[2,512], index: 0, kind: input, shape index: {}]   ;;  %s123_s1 = inlined_call_operand.hbm [shape: f32[2,3072], index: 1, kind: output, shape index: {}]  }
   0x1   :  { %7 = vsyncpa [#allocation4], 0  ;;  %s104_s6 = smov [#allocation2]  }
   0x2   :  { %s14_s7 = sshll.u32 %s104_s6, 4  ;;  %s15_s7 = int_to_ptr.vmem [resolvable:$true] %s14_s7 }
   0x3   :  { %s68_s8 = scalar_lea.vmem %s15_s7, 128  ;;  %p73_p1 = scmp.lt.s32.totalorder %s15_s7, %s15_s7 }
   0x4   :  { %p69_p0 = scmp.ne.s32.totalorder %s15_s7, %s68_s8  ;;  %p74_p2 = scmp.lt.s32.totalorder %s68_s8, %s68_s8 }
   0x6   :  { %p75_p3 = por %p74_p2, %p73_p1 }
   0x8   :  { %p76_p4 = pnand %p75_p3, %p69_p0 }
   0xa   :  { %79 = shalt.err (!%p76_p4)
}
   0xb   :  { %17 = dma.hbm_to_vmem [thread:$0]  %s122_s0, 128, %s15_s7, [#allocation3]  }
   0xc   :  { %100 = dma.done.wait [#allocation3], 128  }
   0xd   :  { %101 = vsyncadd [#allocation3], 4294967168  ;;  %v21_v0 = vld [vmem:[#allocation2] sm:$0xf]  ;;  %v22_v1 = vld [vmem:[#allocation2 + $0x4] sm:$0xf] }
   0xe   :  { %s105_s11 = smov [#allocation5]   ;;  %v23_v2 = vmul.f32 0.9238795, %v21_v0  ;;  %v25_v3 = vmul.f32 0.38268343, %v21_v0 }
   0xf   :  { %s49_s12 = sshll.u32 %s105_s11, 4  ;;  %27 = vst [vmem:[#allocation5 + $0x8] sm:$0xf] %v22_v1  ;;  %32 = vst [vmem:[#allocation5 + $0x14] sm:$0xf] %v22_v1  ;;  %s50_s12 = int_to_ptr.vmem [resolvable:$true] %s49_s12 }
  0x10   :  { %37 = vst [vmem:[#allocation5 + $0x20] sm:$0xf] %v22_v1  ;;  %42 = vst [vmem:[#allocation5 + $0x2c] sm:$0xf] %v22_v1  ;;  %v28_v4 = vmul.f32 0.9951847, %v21_v0  ;;  %p85_p6 = scmp.lt.s32.totalorder %s50_s12, %s50_s12 }
  0x11   :  { %v30_v5 = vmul.f32 0.09801714, %v21_v0  ;;  %v33_v6 = vmul.f32 0.9996988, %v21_v0  ;;  %v35_v7 = vmul.f32 0.024541229, %v21_v0 }
  0x12   :  { %24 = vst [vmem:[#allocation5] sm:$0xf] %v23_v2  ;;  %26 = vst [vmem:[#allocation5 + $0x4] sm:$0xf] %v25_v3  ;;  %v38_v8 = vmul.f32 0.99998116, %v21_v0 }
  0x13   :  { %29 = vst [vmem:[#allocation5 + $0xc] sm:$0xf] %v28_v4  ;;  %v40_v9 = vmul.f32 0.0061358847, %v21_v0  ;;  %31 = vst [vmem:[#allocation5 + $0x10] sm:$0xf] %v30_v5 }
  0x14   :  { %34 = vst [vmem:[#allocation5 + $0x18] sm:$0xf] %v33_v6  ;;  %36 = vst [vmem:[#allocation5 + $0x1c] sm:$0xf] %v35_v7  ;;  %s80_s0 = scalar_lea.vmem %s50_s12, 768 }
  0x15   :  { %39 = vst [vmem:[#allocation5 + $0x24] sm:$0xf] %v38_v8  ;;  %41 = vst [vmem:[#allocation5 + $0x28] sm:$0xf] %v40_v9  ;;  %p81_p5 = scmp.ne.s32.totalorder %s50_s12, %s80_s0  ;;  %p86_p7 = scmp.lt.s32.totalorder %s80_s0, %s80_s0 }
  0x17   :  { %p87_p8 = por %p86_p7, %p85_p6 }
  0x19   :  { %p88_p9 = pnand %p87_p8, %p81_p5 }
  0x1b   :  { %91 = shalt.err (!%p88_p9)
}
  0x1c   :  { %52 = dma.vmem_to_hbm [thread:$0]  %s50_s12, 768, %s123_s1, [#allocation4]  }
  0x1d   :  { %102 = dma.done.wait [#allocation4], 768  }
  0x1e   :  { %103 = vsyncadd [#allocation4], 4294966528 }
  0x1f   :  { %56 = vsyncpa [#allocation3], 1 }
  0x20   :  { %57 = vsyncpa [#allocation4], 1 }

</bundles_post_ra>
